<compile_context>
chip_gen: v7x
topology: tpu7x:2x2x1
jax: 0.10.0
libtpu: 0.0.40
codegen_flags: <defaults>
</compile_context>

<pallas_src>
import functools

import jax
import jax.numpy as jnp
from jax import lax
from jax.experimental import pallas as pl
from jax.experimental.pallas import tpu as pltpu

BN_EPS = 1e-5
LANE = 128                        # TPU lane width: channels padded to this (lane-dense I/O)
VMEM_LIMIT = 32 * 1024 * 1024     # explicit; well under the v7x 64 MiB cap with our tiles
TARGET_ROWS = 2048                # rows (batch*length) per grid step (>=512 per the review)


def _round_up(x, m):
    return (x + m - 1) // m * m


def _pad2(a, rows, cols):
    return jnp.pad(a, ((0, rows - a.shape[0]), (0, cols - a.shape[1])))


def _pick_batch_tile(n, l_out, target_rows=TARGET_ROWS):
    """Largest divisor of n whose block holds <= target_rows rows (>= 1)."""
    cap = max(1, target_rows // max(1, l_out))
    tile = 1
    for d in range(1, min(n, cap) + 1):
        if n % d == 0:
            tile = d
    return tile


# ----------------------------------------------------------------------------
# In-kernel helpers
# ----------------------------------------------------------------------------
def _write_block_stats(z_f32, s_ref, n_rows):
    """Per-block BatchNorm partials from the f32 z (before the bf16 downcast).

    Row 0: sum over rows. Row 1: sum of squared deviations around the BLOCK mean
    (Welford-style shifted sums -> no E[x^2]-E[x]^2 cancellation).
    Rows are written separately (no (2, C) concat temp).
    """
    row_sum = jnp.sum(z_f32, axis=0, keepdims=True)
    dev = z_f32 - row_sum * (1.0 / n_rows)
    s_ref[0:1, :] = row_sum
    s_ref[1:2, :] = jnp.sum(dev * dev, axis=0, keepdims=True)


# ----------------------------------------------------------------------------
# Kernels
# ----------------------------------------------------------------------------
def make_input_nodes_kernel(k_nodes):
    """All (stride-2) input Node_OPs fused into one kernel.

    The raw even/odd input block is read once; each node applies its own
    depthwise 3-tap / pointwise 1x1 weights and emits (z bf16, partial stats).
    """

    def kernel(*refs):
        xe_ref, xo_ref = refs[0], refs[1]
        w = refs[2:2 + 4 * k_nodes]                 # per node: dw, dwb, pw(bf16), pwb
        outs = refs[2 + 4 * k_nodes:]
        z_refs, s_refs = outs[:k_nodes], outs[k_nodes:]

        re3 = jnp.maximum(xe_ref[...], 0.0)         # ReLU(x[2l])
        ro3 = jnp.maximum(xo_ref[...], 0.0)         # ReLU(x[2l+1])
        bsz, l_out, c_in = re3.shape
        rows = bsz * l_out
        zero = jnp.zeros((bsz, 1, c_in), jnp.float32)
        # stride-2, padding=1 taps: x[2l-1] (zero at l=0), x[2l], x[2l+1]
        t_prev = jnp.concatenate([zero, ro3[:, :l_out - 1, :]], axis=1).reshape(rows, c_in)
        re = re3.reshape(rows, c_in)
        ro = ro3.reshape(rows, c_in)

        for node in range(k_nodes):
            dw, dwb, pw, pwb = w[4 * node:4 * node + 4]
            y = (t_prev * dw[0:1, :] + re * dw[1:2, :] + ro * dw[2:3, :] + dwb[...])
            # pointwise 1x1 conv == channel matmul; bf16 operands on the MXU, f32 accum.
            z = jnp.dot(y.astype(jnp.bfloat16), pw[...],
                        preferred_element_type=jnp.float32) + pwb[...]
            _write_block_stats(z, s_refs[node], rows)           # stats from f32 z
            z_refs[node][...] = z.astype(jnp.bfloat16).reshape(z_refs[node].shape)

    return kernel


def make_merge_node_kernel(k_parents):
    """Non-input (stride-1) Node_OP with parents' BatchNorm + sigmoid merge fused in."""

    def kernel(*refs):
        zp = refs[:k_parents]                       # K x (B, L, C_in_pad) bf16 parent conv outs
        a_ref = refs[k_parents]                     # (K, C_in_pad): sigmoid(w_j) * bn_scale_j
        b_ref = refs[k_parents + 1]                 # (1, C_in_pad): sum_j sigmoid(w_j)*bn_shift_j
        dw, dwb, pw, pwb = refs[k_parents + 2:k_parents + 6]
        z_ref, s_ref = refs[k_parents + 6], refs[k_parents + 7]

        bsz, l_out, c_in = zp[0].shape
        rows = bsz * l_out
        # parents' BN + weighted merge folded into one affine, applied on load (f32).
        m = zp[0][...].reshape(rows, c_in).astype(jnp.float32) * a_ref[0:1, :]
        for j in range(1, k_parents):
            m = m + zp[j][...].reshape(rows, c_in).astype(jnp.float32) * a_ref[j:j + 1, :]
        r2 = jnp.maximum(m + b_ref[...], 0.0)       # ReLU of the merged input
        r3 = r2.reshape(bsz, l_out, c_in)
        zero = jnp.zeros((bsz, 1, c_in), jnp.float32)
        # stride-1, padding=1 taps built from shifted slices (no (L+2) padded temp).
        t_prev = jnp.concatenate([zero, r3[:, :l_out - 1, :]], axis=1).reshape(rows, c_in)
        t_next = jnp.concatenate([r3[:, 1:, :], zero], axis=1).reshape(rows, c_in)
        y = (t_prev * dw[0:1, :] + r2 * dw[1:2, :] + t_next * dw[2:3, :] + dwb[...])
        z = jnp.dot(y.astype(jnp.bfloat16), pw[...],
                    preferred_element_type=jnp.float32) + pwb[...]
        _write_block_stats(z, s_ref, rows)
        z_ref[...] = z.astype(jnp.bfloat16).reshape(z_ref.shape)

    return kernel


def make_output_avg_kernel(k_out):
    """Fused epilogue: apply each output node's BatchNorm affine and average."""

    def kernel(*refs):
        zp = refs[:k_out]
        a_ref = refs[k_out]          # (K, C_pad): bn_scale_j / K
        b_ref = refs[k_out + 1]      # (1, C_pad): sum_j bn_shift_j / K
        o_ref = refs[k_out + 2]
        bsz, l_out, c = zp[0].shape
        rows = bsz * l_out
        acc = zp[0][...].reshape(rows, c).astype(jnp.float32) * a_ref[0:1, :]
        for j in range(1, k_out):
            acc = acc + zp[j][...].reshape(rows, c).astype(jnp.float32) * a_ref[j:j + 1, :]
        o_ref[...] = (acc + b_ref[...]).reshape(o_ref.shape)

    return kernel


# ----------------------------------------------------------------------------
# Wrappers (one pallas_call per node group, gridded over batch tiles)
# ----------------------------------------------------------------------------
def _bn_affine_from_partials(stats, rows_per_block, total_rows, gamma_pad, beta_pad):
    """Merge per-block [sum, ssd-around-block-mean] partials (parallel/Welford combine)
    and fold training-mode BatchNorm1d (biased variance) into a per-channel affine."""
    sums = stats[:, 0, :]                                  # (G, C)
    ssds = stats[:, 1, :]                                  # (G, C)
    mean = jnp.sum(sums, axis=0) / total_rows
    block_mean = sums / rows_per_block
    between = jnp.sum((block_mean - mean[None, :]) ** 2, axis=0) * rows_per_block
    var = jnp.maximum((jnp.sum(ssds, axis=0) + between) / total_rows, 0.0)
    scale = gamma_pad * lax.rsqrt(var + BN_EPS)
    shift = beta_pad - mean * scale
    return scale, shift


def _padded_node_params(p, c_in_pad, c_out_pad):
    return (
        _pad2(p["dw_w"], 3, c_in_pad),
        _pad2(p["dw_b"], 1, c_in_pad),
        _pad2(p["pw_w"], c_in_pad, c_out_pad).astype(jnp.bfloat16),   # pre-cast to bf16 once
        _pad2(p["pw_b"], 1, c_out_pad),
        jnp.pad(p["gamma"][0], (0, c_out_pad - p["gamma"].shape[1])),  # pad gamma/beta with 0
        jnp.pad(p["beta"][0], (0, c_out_pad - p["beta"].shape[1])),    # so padded lanes stay 0
    )


def run_input_nodes(x_even, x_odd, node_params, b_tile):
    """Run ALL input nodes in one pallas_call (shared read of the raw input)."""
    k = len(node_params)
    n, l_out, c_in_pad = x_even.shape
    c_out = node_params[0]["pw_w"].shape[1]
    c_out_pad = _round_up(c_out, LANE)
    grid_n = n // b_tile

    w_args, gammas, betas = [], [], []
    for p in node_params:
        dw, dwb, pw_bf, pwb, gm, bt = _padded_node_params(p, c_in_pad, c_out_pad)
        w_args += [dw, dwb, pw_bf, pwb]
        gammas.append(gm)
        betas.append(bt)

    row3 = lambda i: (i, 0, 0)
    const2 = lambda i: (0, 0)
    w_specs = []
    for _ in range(k):
        w_specs += [pl.BlockSpec((3, c_in_pad), const2),
                    pl.BlockSpec((1, c_in_pad), const2),
                    pl.BlockSpec((c_in_pad, c_out_pad), const2),
                    pl.BlockSpec((1, c_out_pad), const2)]

    outs = pl.pallas_call(
        make_input_nodes_kernel(k),
        grid=(grid_n,),
        in_specs=[pl.BlockSpec((b_tile, l_out, c_in_pad), row3),
                  pl.BlockSpec((b_tile, l_out, c_in_pad), row3)] + w_specs,
        out_specs=([pl.BlockSpec((b_tile, l_out, c_out_pad), row3)] * k
                   + [pl.BlockSpec((None, 2, c_out_pad), row3)] * k),
        out_shape=([jax.ShapeDtypeStruct((n, l_out, c_out_pad), jnp.bfloat16)] * k
                   + [jax.ShapeDtypeStruct((grid_n, 2, c_out_pad), jnp.float32)] * k),
        compiler_params=pltpu.CompilerParams(
            dimension_semantics=("parallel",),      # no carried state -> both v7x TCs usable
            vmem_limit_bytes=VMEM_LIMIT,
        ),
    )(x_even, x_odd, *w_args)

    zs, stats = outs[:k], outs[k:]
    rows_per_block, total_rows = b_tile * l_out, n * l_out
    results = []
    for j in range(k):
        scale, shift = _bn_affine_from_partials(stats[j], rows_per_block, total_rows,
                                                gammas[j], betas[j])
        results.append((zs[j], scale, shift))
    return results


def run_merge_node(parents, merge_w, p, b_tile):
    k = len(parents)
    zs = [t[0] for t in parents]
    n, l_out, c_in_pad = zs[0].shape
    c_out = p["pw_w"].shape[1]
    c_out_pad = _round_up(c_out, LANE)
    dw, dwb, pw_bf, pwb, gamma, beta = _padded_node_params(p, c_in_pad, c_out_pad)

    # Fold each parent's BatchNorm affine and the sigmoid merge weight into (scale, shift).
    a_vec = jnp.stack([merge_w[j] * parents[j][1] for j in range(k)], axis=0)  # (K, C_in_pad)
    b_vec = sum(merge_w[j] * parents[j][2] for j in range(k))[None, :]         # (1, C_in_pad)

    grid_n = n // b_tile
    row3 = lambda i: (i, 0, 0)
    const2 = lambda i: (0, 0)
    z, stats = pl.pallas_call(
        make_merge_node_kernel(k),
        grid=(grid_n,),
        in_specs=(
            [pl.BlockSpec((b_tile, l_out, c_in_pad), row3) for _ in range(k)]
            + [
                pl.BlockSpec((k, c_in_pad), const2),
                pl.BlockSpec((1, c_in_pad), const2),
                pl.BlockSpec((3, c_in_pad), const2),
                pl.BlockSpec((1, c_in_pad), const2),
                pl.BlockSpec((c_in_pad, c_out_pad), const2),
                pl.BlockSpec((1, c_out_pad), const2),
            ]
        ),
        out_specs=[pl.BlockSpec((b_tile, l_out, c_out_pad), row3),
                   pl.BlockSpec((None, 2, c_out_pad), row3)],
        out_shape=[jax.ShapeDtypeStruct((n, l_out, c_out_pad), jnp.bfloat16),
                   jax.ShapeDtypeStruct((grid_n, 2, c_out_pad), jnp.float32)],
        compiler_params=pltpu.CompilerParams(
            dimension_semantics=("parallel",),
            vmem_limit_bytes=VMEM_LIMIT,
        ),
    )(*zs, a_vec, b_vec, dw, dwb, pw_bf, pwb)

    scale, shift = _bn_affine_from_partials(stats, b_tile * l_out, n * l_out, gamma, beta)
    return z, scale, shift


def run_output_average(outs, b_tile):
    k = len(outs)
    zs = [t[0] for t in outs]
    n, l_out, c_pad = zs[0].shape
    a_vec = jnp.stack([outs[j][1] / k for j in range(k)], axis=0)   # BN scale / K
    b_vec = (sum(outs[j][2] for j in range(k)) / k)[None, :]        # summed BN shift / K

    grid_n = n // b_tile
    row3 = lambda i: (i, 0, 0)
    const2 = lambda i: (0, 0)
    return pl.pallas_call(
        make_output_avg_kernel(k),
        grid=(grid_n,),
        in_specs=(
            [pl.BlockSpec((b_tile, l_out, c_pad), row3) for _ in range(k)]
            + [pl.BlockSpec((k, c_pad), const2), pl.BlockSpec((1, c_pad), const2)]
        ),
        out_specs=pl.BlockSpec((b_tile, l_out, c_pad), row3),
        out_shape=jax.ShapeDtypeStruct((n, l_out, c_pad), jnp.float32),
        compiler_params=pltpu.CompilerParams(
            dimension_semantics=("parallel",),
            vmem_limit_bytes=VMEM_LIMIT,
        ),
    )(*zs, a_vec, b_vec)


# ----------------------------------------------------------------------------
# Graph (deterministic stand-in for get_graph_info)
# ----------------------------------------------------------------------------
class Node:
    def __init__(self, node_id, inputs, node_type):
        self.id = node_id
        self.inputs = inputs
        self.type = node_type


def build_graph():
    nodes = [
        Node(0, [], 0),        # input node
        Node(1, [], 0),        # input node
        Node(2, [0, 1], -1),
        Node(3, [1, 2], -1),
        Node(4, [2, 3], -1),
    ]
    return nodes, [0, 1], [3, 4]


def init_node_params(key, c_in, c_out, n_inputs):
    k = jax.random.split(key, 6)
    return {
        "dw_w": 0.3 * jax.random.normal(k[0], (3, c_in), jnp.float32),
        "dw_b": 0.1 * jax.random.normal(k[1], (1, c_in), jnp.float32),
        "pw_w": 0.3 * jax.random.normal(k[2], (c_in, c_out), jnp.float32),
        "pw_b": 0.1 * jax.random.normal(k[3], (1, c_out), jnp.float32),
        "gamma": 1.0 + 0.1 * jax.random.normal(k[4], (1, c_out), jnp.float32),
        "beta": 0.1 * jax.random.normal(k[5], (1, c_out), jnp.float32),
        # PyTorch initializes mean_weight to ones when a node has >1 inputs
        "mean_weight": (jnp.ones((n_inputs,), jnp.float32) if n_inputs > 1 else None),
    }


# ----------------------------------------------------------------------------
# StageBlock forward (Pallas)
# ----------------------------------------------------------------------------
def stage_block_forward(x_ncl, nodes, input_nodes, output_nodes, params):
    n, c_in, l = x_ncl.shape
    assert l % 2 == 0, "even sequence length assumed for the stride-2 input nodes"
    l_out = l // 2
    c_in_pad = _round_up(c_in, LANE)
    outplanes = params[output_nodes[0]]["pw_w"].shape[1]
    b_tile = _pick_batch_tile(n, l_out)

    # One-time layout prep on the raw input only: NCL -> NLC, lane-pad channels,
    # even/odd split of the length axis so the stride-2 taps become contiguous in-kernel.
    x_nlc = jnp.pad(jnp.transpose(x_ncl, (0, 2, 1)),
                    ((0, 0), (0, 0), (0, c_in_pad - c_in)))
    x_even = x_nlc[:, 0::2, :]
    x_odd = x_nlc[:, 1::2, :]

    # All input nodes in ONE pallas_call (raw input read from HBM once).
    input_params = [params[nid] for nid in input_nodes]
    input_results = run_input_nodes(x_even, x_odd, input_params, b_tile)
    results = {nid: res for nid, res in zip(input_nodes, input_results)}

    for nid, node in enumerate(nodes):
        if nid in input_nodes:
            continue
        p = params[nid]
        parents = [results[i] for i in node.inputs]
        if len(node.inputs) > 1:
            merge_w = jax.nn.sigmoid(p["mean_weight"])
        else:
            merge_w = jnp.ones((1,), jnp.float32)
        results[nid] = run_merge_node(parents, merge_w, p, b_tile)

    out_nlc = run_output_average([results[i] for i in output_nodes], b_tile)
    # TODO(synk): emit NCL (length on the lane axis) directly from the epilogue kernel
    # for real L >= 128 to drop this wrapper transpose + slice.
    return jnp.transpose(out_nlc[:, :, :outplanes], (0, 2, 1))   # back to NCL, drop lane pad


# ----------------------------------------------------------------------------
# Pure-JAX references (mirror the PyTorch module, NCL layout)
#   mode="f32":    exact PyTorch-equivalent math (all f32)
#   mode="mirror": matches the kernel numerics (bf16 matmul operands + bf16-stored z,
#                  BN stats taken from the f32 z)
# ----------------------------------------------------------------------------
def ref_triplet(x_ncl, p, stride, mode):
    c_in = x_ncl.shape[1]
    r = jnp.maximum(x_ncl, 0.0)
    dw_w = jnp.transpose(p["dw_w"])[:, None, :]            # (C_in, 1, 3)
    y = lax.conv_general_dilated(
        r, dw_w, window_strides=(stride,), padding=((1, 1),),
        feature_group_count=c_in,
        dimension_numbers=("NCH", "OIH", "NCH")) + p["dw_b"][0][None, :, None]
    pw_w = jnp.transpose(p["pw_w"])[:, :, None]            # (C_out, C_in, 1)
    if mode == "mirror":
        y_c, w_c = y.astype(jnp.bfloat16), pw_w.astype(jnp.bfloat16)
    else:
        y_c, w_c = y, pw_w
    z = lax.conv_general_dilated(
        y_c, w_c, window_strides=(1,), padding=((0, 0),),
        dimension_numbers=("NCH", "OIH", "NCH"),
        preferred_element_type=jnp.float32) + p["pw_b"][0][None, :, None]
    mean = jnp.mean(z, axis=(0, 2), keepdims=True)                  # stats from f32 z
    var = jnp.mean((z - mean) ** 2, axis=(0, 2), keepdims=True)
    z_used = z.astype(jnp.bfloat16).astype(jnp.float32) if mode == "mirror" else z
    zhat = (z_used - mean) * lax.rsqrt(var + BN_EPS)
    return zhat * p["gamma"][0][None, :, None] + p["beta"][0][None, :, None]


def ref_stage_block(x_ncl, nodes, input_nodes, output_nodes, params, mode):
    results = {}
    for nid in input_nodes:
        results[nid] = ref_triplet(x_ncl, params[nid], 2, mode)
    for nid, node in enumerate(nodes):
        if nid in input_nodes:
            continue
        p = params[nid]
        ins = [results[i] for i in node.inputs]
        if len(node.inputs) > 1:
            w = jax.nn.sigmoid(p["mean_weight"])
            merged = w[0] * ins[0]
            for j in range(1, len(ins)):
                merged = merged + w[j] * ins[j]
        else:
            merged = ins[0]
        results[nid] = ref_triplet(merged, p, 1, mode)
    out = results[output_nodes[0]]
    for nid in output_nodes[1:]:
        out = out + results[nid]
    return out / len(output_nodes)


# ----------------------------------------------------------------------------
if __name__ == "__main__":
    key = jax.random.PRNGKey(0)
    batch, inplanes, outplanes, length = 2, 4, 8, 16

    nodes, input_nodes, output_nodes = build_graph()

    key, xk = jax.random.split(key)
    x = jax.random.normal(xk, (batch, inplanes, length), jnp.float32)   # NCL, like Conv1d

    params = {}
    for nid, node in enumerate(nodes):
        key, pk = jax.random.split(key)
        c_in = inplanes if node.type == 0 else outplanes
        params[nid] = init_node_params(pk, c_in, outplanes, len(node.inputs))

    fwd = jax.jit(functools.partial(stage_block_forward, nodes=nodes,
                                    input_nodes=input_nodes,
                                    output_nodes=output_nodes))
    out = jax.block_until_ready(fwd(x, params=params))

    # Tight check against a reference that mirrors the kernel numerics (bf16 MXU
    # operands + bf16-stored intermediates, f32 BN stats); loose sanity check
    # against the pure-f32 PyTorch-equivalent reference.
    ref_mirror = jax.block_until_ready(
        ref_stage_block(x, nodes, input_nodes, output_nodes, params, mode="mirror"))
    ref_f32 = jax.block_until_ready(
        ref_stage_block(x, nodes, input_nodes, output_nodes, params, mode="f32"))

    assert out.shape == (batch, outplanes, length // 2), out.shape
    assert jnp.allclose(out, ref_mirror, atol=5e-3, rtol=5e-3), \
        float(jnp.max(jnp.abs(out - ref_mirror)))
    assert jnp.allclose(out, ref_f32, atol=2e-1, rtol=2e-1), \
        float(jnp.max(jnp.abs(out - ref_f32)))

    print("KERNEL_OK")
</pallas_src>

<mosaic_0001>
module attributes {stable_mosaic.version = 11 : i64} {
  func.func @kernel(%arg0: i32, %arg1: memref<2x8x128xf32, #tpu.memory_space<vmem>>, %arg2: memref<2x8x128xf32, #tpu.memory_space<vmem>>, %arg3: memref<3x128xf32, #tpu.memory_space<vmem>>, %arg4: memref<1x128xf32, #tpu.memory_space<vmem>>, %arg5: memref<128x128xbf16, #tpu.memory_space<vmem>>, %arg6: memref<1x128xf32, #tpu.memory_space<vmem>>, %arg7: memref<3x128xf32, #tpu.memory_space<vmem>>, %arg8: memref<1x128xf32, #tpu.memory_space<vmem>>, %arg9: memref<128x128xbf16, #tpu.memory_space<vmem>>, %arg10: memref<1x128xf32, #tpu.memory_space<vmem>>, %arg11: memref<2x8x128xbf16, #tpu.memory_space<vmem>>, %arg12: memref<2x8x128xbf16, #tpu.memory_space<vmem>>, %arg13: memref<1x2x128xf32, #tpu.memory_space<vmem>>, %arg14: memref<1x2x128xf32, #tpu.memory_space<vmem>>) attributes {dimension_semantics = [#tpu.dimension_semantics<parallel>], iteration_bounds = array<i64: 1>, scalar_prefetch = 0 : i64, scratch_operands = 0 : i64, tpu.core_type = #tpu.core_type<tc>, window_params = [{transform_indices = @transform_0, window_bounds = array<i64: 2, 8, 128>}, {transform_indices = @transform_1, window_bounds = array<i64: 2, 8, 128>}, {pipeline_mode = #tpu.pipeline_mode<synchronous>, transform_indices = @transform_2, window_bounds = array<i64: 3, 128>}, {pipeline_mode = #tpu.pipeline_mode<synchronous>, transform_indices = @transform_3, window_bounds = array<i64: 1, 128>}, {pipeline_mode = #tpu.pipeline_mode<synchronous>, transform_indices = @transform_4, window_bounds = array<i64: 128, 128>}, {pipeline_mode = #tpu.pipeline_mode<synchronous>, transform_indices = @transform_5, window_bounds = array<i64: 1, 128>}, {pipeline_mode = #tpu.pipeline_mode<synchronous>, transform_indices = @transform_6, window_bounds = array<i64: 3, 128>}, {pipeline_mode = #tpu.pipeline_mode<synchronous>, transform_indices = @transform_7, window_bounds = array<i64: 1, 128>}, {pipeline_mode = #tpu.pipeline_mode<synchronous>, transform_indices = @transform_8, window_bounds = array<i64: 128, 128>}, {pipeline_mode = #tpu.pipeline_mode<synchronous>, transform_indices = @transform_9, window_bounds = array<i64: 1, 128>}, {transform_indices = @transform_10, window_bounds = array<i64: 2, 8, 128>}, {transform_indices = @transform_11, window_bounds = array<i64: 2, 8, 128>}, {transform_indices = @transform_12, window_bounds = array<i64: 1, 2, 128>}, {transform_indices = @transform_13, window_bounds = array<i64: 1, 2, 128>}]} {
    %c0 = arith.constant 0 : index
    %c0_0 = arith.constant 0 : index
    %c0_1 = arith.constant 0 : index
    %0 = vector.load %arg1[%c0, %c0_0, %c0_1] : memref<2x8x128xf32, #tpu.memory_space<vmem>>, vector<2x8x128xf32>
    %cst = arith.constant 0.000000e+00 : f32
    %1 = vector.broadcast %cst : f32 to vector<2x8x128xf32>
    %2 = arith.maximumf %0, %1 : vector<2x8x128xf32>
    %c0_2 = arith.constant 0 : index
    %c0_3 = arith.constant 0 : index
    %c0_4 = arith.constant 0 : index
    %3 = vector.load %arg2[%c0_2, %c0_3, %c0_4] : memref<2x8x128xf32, #tpu.memory_space<vmem>>, vector<2x8x128xf32>
    %cst_5 = arith.constant 0.000000e+00 : f32
    %4 = vector.broadcast %cst_5 : f32 to vector<2x8x128xf32>
    %5 = arith.maximumf %3, %4 : vector<2x8x128xf32>
    %cst_6 = arith.constant 0.000000e+00 : f32
    %6 = vector.broadcast %cst_6 : f32 to vector<2x1x128xf32>
    %7 = vector.extract_strided_slice %5 {offsets = [0, 0, 0], sizes = [2, 7, 128], strides = [1, 1, 1]} : vector<2x8x128xf32> to vector<2x7x128xf32>
    %8 = tpu.concatenate %6, %7 in 1 : vector<2x1x128xf32>, vector<2x7x128xf32> -> vector<2x8x128xf32>
    %9 = vector.shape_cast %8 : vector<2x8x128xf32> to vector<16x128xf32>
    %10 = vector.shape_cast %2 : vector<2x8x128xf32> to vector<16x128xf32>
    %11 = vector.shape_cast %5 : vector<2x8x128xf32> to vector<16x128xf32>
    %c0_7 = arith.constant 0 : index
    %c0_8 = arith.constant 0 : index
    %12 = vector.load %arg3[%c0_7, %c0_8] : memref<3x128xf32, #tpu.memory_space<vmem>>, vector<1x128xf32>
    %13 = vector.broadcast %12 : vector<1x128xf32> to vector<16x128xf32>
    %14 = arith.mulf %9, %13 : vector<16x128xf32>
    %c1 = arith.constant 1 : index
    %c0_9 = arith.constant 0 : index
    %15 = vector.load %arg3[%c1, %c0_9] : memref<3x128xf32, #tpu.memory_space<vmem>>, vector<1x128xf32>
    %16 = vector.broadcast %15 : vector<1x128xf32> to vector<16x128xf32>
    %17 = arith.mulf %10, %16 : vector<16x128xf32>
    %18 = arith.addf %14, %17 : vector<16x128xf32>
    %c2 = arith.constant 2 : index
    %c0_10 = arith.constant 0 : index
    %19 = vector.load %arg3[%c2, %c0_10] : memref<3x128xf32, #tpu.memory_space<vmem>>, vector<1x128xf32>
    %20 = vector.broadcast %19 : vector<1x128xf32> to vector<16x128xf32>
    %21 = arith.mulf %11, %20 : vector<16x128xf32>
    %22 = arith.addf %18, %21 : vector<16x128xf32>
    %c0_11 = arith.constant 0 : index
    %c0_12 = arith.constant 0 : index
    %23 = vector.load %arg4[%c0_11, %c0_12] : memref<1x128xf32, #tpu.memory_space<vmem>>, vector<1x128xf32>
    %24 = vector.broadcast %23 : vector<1x128xf32> to vector<16x128xf32>
    %25 = arith.addf %22, %24 : vector<16x128xf32>
    %26 = arith.truncf %25 : vector<16x128xf32> to vector<16x128xbf16>
    %c0_13 = arith.constant 0 : index
    %c0_14 = arith.constant 0 : index
    %27 = vector.load %arg5[%c0_13, %c0_14] : memref<128x128xbf16, #tpu.memory_space<vmem>>, vector<128x128xbf16>
    %cst_15 = arith.constant dense<0.000000e+00> : vector<16x128xf32>
    %28 = tpu.matmul %26, %27, %cst_15 {dimension_numbers = #tpu.dot_dimension_numbers<[1], [0], [0], [1], [0, 0, 1, 1], [], []>} : vector<16x128xbf16>, vector<128x128xbf16>, vector<16x128xf32> -> vector<16x128xf32>
    %c0_16 = arith.constant 0 : index
    %c0_17 = arith.constant 0 : index
    %29 = vector.load %arg6[%c0_16, %c0_17] : memref<1x128xf32, #tpu.memory_space<vmem>>, vector<1x128xf32>
    %30 = vector.broadcast %29 : vector<1x128xf32> to vector<16x128xf32>
    %31 = arith.addf %28, %30 : vector<16x128xf32>
    %cst_18 = arith.constant dense<0.000000e+00> : vector<128xf32>
    %32 = vector.multi_reduction <add>, %31, %cst_18 [0] : vector<16x128xf32> to vector<128xf32>
    %33 = vector.shape_cast %32 : vector<128xf32> to vector<1x128xf32>
    %cst_19 = arith.constant 6.250000e-02 : f32
    %34 = vector.broadcast %cst_19 : f32 to vector<1x128xf32>
    %35 = arith.mulf %33, %34 : vector<1x128xf32>
    %36 = vector.broadcast %35 : vector<1x128xf32> to vector<16x128xf32>
    %37 = arith.subf %31, %36 : vector<16x128xf32>
    %c0_20 = arith.constant 0 : index
    %c0_21 = arith.constant 0 : index
    %c0_22 = arith.constant 0 : index
    %38 = vector.load %arg13[%c0_20, %c0_21, %c0_22] : memref<1x2x128xf32, #tpu.memory_space<vmem>>, vector<1x1x128xf32>
    %39 = vector.shape_cast %38 : vector<1x1x128xf32> to vector<1x128xf32>
    %40 = vector.shape_cast %33 : vector<1x128xf32> to vector<1x1x128xf32>
    tpu.vector_store %arg13[%c0_20, %c0_21, %c0_22], %40 {strides = array<i32>} : memref<1x2x128xf32, #tpu.memory_space<vmem>>, vector<1x1x128xf32>,
    %41 = arith.mulf %37, %37 : vector<16x128xf32>
    %cst_23 = arith.constant dense<0.000000e+00> : vector<128xf32>
    %42 = vector.multi_reduction <add>, %41, %cst_23 [0] : vector<16x128xf32> to vector<128xf32>
    %43 = vector.shape_cast %42 : vector<128xf32> to vector<1x128xf32>
    %c0_24 = arith.constant 0 : index
    %c1_25 = arith.constant 1 : index
    %c0_26 = arith.constant 0 : index
    %44 = vector.load %arg13[%c0_24, %c1_25, %c0_26] : memref<1x2x128xf32, #tpu.memory_space<vmem>>, vector<1x1x128xf32>
    %45 = vector.shape_cast %44 : vector<1x1x128xf32> to vector<1x128xf32>
    %46 = vector.shape_cast %43 : vector<1x128xf32> to vector<1x1x128xf32>
    tpu.vector_store %arg13[%c0_24, %c1_25, %c0_26], %46 {strides = array<i32>} : memref<1x2x128xf32, #tpu.memory_space<vmem>>, vector<1x1x128xf32>,
    %47 = arith.truncf %31 : vector<16x128xf32> to vector<16x128xbf16>
    %48 = vector.shape_cast %47 : vector<16x128xbf16> to vector<2x8x128xbf16>
    %c0_27 = arith.constant 0 : index
    %c0_28 = arith.constant 0 : index
    %c0_29 = arith.constant 0 : index
    %49 = vector.load %arg11[%c0_27, %c0_28, %c0_29] : memref<2x8x128xbf16, #tpu.memory_space<vmem>>, vector<2x8x128xbf16>
    tpu.vector_store %arg11[%c0_27, %c0_28, %c0_29], %48 {strides = array<i32>} : memref<2x8x128xbf16, #tpu.memory_space<vmem>>, vector<2x8x128xbf16>,
    %c0_30 = arith.constant 0 : index
    %c0_31 = arith.constant 0 : index
    %50 = vector.load %arg7[%c0_30, %c0_31] : memref<3x128xf32, #tpu.memory_space<vmem>>, vector<1x128xf32>
    %51 = vector.broadcast %50 : vector<1x128xf32> to vector<16x128xf32>
    %52 = arith.mulf %9, %51 : vector<16x128xf32>
    %c1_32 = arith.constant 1 : index
    %c0_33 = arith.constant 0 : index
    %53 = vector.load %arg7[%c1_32, %c0_33] : memref<3x128xf32, #tpu.memory_space<vmem>>, vector<1x128xf32>
    %54 = vector.broadcast %53 : vector<1x128xf32> to vector<16x128xf32>
    %55 = arith.mulf %10, %54 : vector<16x128xf32>
    %56 = arith.addf %52, %55 : vector<16x128xf32>
    %c2_34 = arith.constant 2 : index
    %c0_35 = arith.constant 0 : index
    %57 = vector.load %arg7[%c2_34, %c0_35] : memref<3x128xf32, #tpu.memory_space<vmem>>, vector<1x128xf32>
    %58 = vector.broadcast %57 : vector<1x128xf32> to vector<16x128xf32>
    %59 = arith.mulf %11, %58 : vector<16x128xf32>
    %60 = arith.addf %56, %59 : vector<16x128xf32>
    %c0_36 = arith.constant 0 : index
    %c0_37 = arith.constant 0 : index
    %61 = vector.load %arg8[%c0_36, %c0_37] : memref<1x128xf32, #tpu.memory_space<vmem>>, vector<1x128xf32>
    %62 = vector.broadcast %61 : vector<1x128xf32> to vector<16x128xf32>
    %63 = arith.addf %60, %62 : vector<16x128xf32>
    %64 = arith.truncf %63 : vector<16x128xf32> to vector<16x128xbf16>
    %c0_38 = arith.constant 0 : index
    %c0_39 = arith.constant 0 : index
    %65 = vector.load %arg9[%c0_38, %c0_39] : memref<128x128xbf16, #tpu.memory_space<vmem>>, vector<128x128xbf16>
    %cst_40 = arith.constant dense<0.000000e+00> : vector<16x128xf32>
    %66 = tpu.matmul %64, %65, %cst_40 {dimension_numbers = #tpu.dot_dimension_numbers<[1], [0], [0], [1], [0, 0, 1, 1], [], []>} : vector<16x128xbf16>, vector<128x128xbf16>, vector<16x128xf32> -> vector<16x128xf32>
    %c0_41 = arith.constant 0 : index
    %c0_42 = arith.constant 0 : index
    %67 = vector.load %arg10[%c0_41, %c0_42] : memref<1x128xf32, #tpu.memory_space<vmem>>, vector<1x128xf32>
    %68 = vector.broadcast %67 : vector<1x128xf32> to vector<16x128xf32>
    %69 = arith.addf %66, %68 : vector<16x128xf32>
    %cst_43 = arith.constant dense<0.000000e+00> : vector<128xf32>
    %70 = vector.multi_reduction <add>, %69, %cst_43 [0] : vector<16x128xf32> to vector<128xf32>
    %71 = vector.shape_cast %70 : vector<128xf32> to vector<1x128xf32>
    %cst_44 = arith.constant 6.250000e-02 : f32
    %72 = vector.broadcast %cst_44 : f32 to vector<1x128xf32>
    %73 = arith.mulf %71, %72 : vector<1x128xf32>
    %74 = vector.broadcast %73 : vector<1x128xf32> to vector<16x128xf32>
    %75 = arith.subf %69, %74 : vector<16x128xf32>
    %c0_45 = arith.constant 0 : index
    %c0_46 = arith.constant 0 : index
    %c0_47 = arith.constant 0 : index
    %76 = vector.load %arg14[%c0_45, %c0_46, %c0_47] : memref<1x2x128xf32, #tpu.memory_space<vmem>>, vector<1x1x128xf32>
    %77 = vector.shape_cast %76 : vector<1x1x128xf32> to vector<1x128xf32>
    %78 = vector.shape_cast %71 : vector<1x128xf32> to vector<1x1x128xf32>
    tpu.vector_store %arg14[%c0_45, %c0_46, %c0_47], %78 {strides = array<i32>} : memref<1x2x128xf32, #tpu.memory_space<vmem>>, vector<1x1x128xf32>,
    %79 = arith.mulf %75, %75 : vector<16x128xf32>
    %cst_48 = arith.constant dense<0.000000e+00> : vector<128xf32>
    %80 = vector.multi_reduction <add>, %79, %cst_48 [0] : vector<16x128xf32> to vector<128xf32>
    %81 = vector.shape_cast %80 : vector<128xf32> to vector<1x128xf32>
    %c0_49 = arith.constant 0 : index
    %c1_50 = arith.constant 1 : index
    %c0_51 = arith.constant 0 : index
    %82 = vector.load %arg14[%c0_49, %c1_50, %c0_51] : memref<1x2x128xf32, #tpu.memory_space<vmem>>, vector<1x1x128xf32>
    %83 = vector.shape_cast %82 : vector<1x1x128xf32> to vector<1x128xf32>
    %84 = vector.shape_cast %81 : vector<1x128xf32> to vector<1x1x128xf32>
    tpu.vector_store %arg14[%c0_49, %c1_50, %c0_51], %84 {strides = array<i32>} : memref<1x2x128xf32, #tpu.memory_space<vmem>>, vector<1x1x128xf32>,
    %85 = arith.truncf %69 : vector<16x128xf32> to vector<16x128xbf16>
    %86 = vector.shape_cast %85 : vector<16x128xbf16> to vector<2x8x128xbf16>
    %c0_52 = arith.constant 0 : index
    %c0_53 = arith.constant 0 : index
    %c0_54 = arith.constant 0 : index
    %87 = vector.load %arg12[%c0_52, %c0_53, %c0_54] : memref<2x8x128xbf16, #tpu.memory_space<vmem>>, vector<2x8x128xbf16>
    tpu.vector_store %arg12[%c0_52, %c0_53, %c0_54], %86 {strides = array<i32>} : memref<2x8x128xbf16, #tpu.memory_space<vmem>>, vector<2x8x128xbf16>,
    return
  }
  func.func @transform_0(%arg0: i32) -> (i32, i32, i32) {
    %c0_i32 = arith.constant 0 : i32
    %c0_i32_0 = arith.constant 0 : i32
    %c0_i32_1 = arith.constant 0 : i32
    return %arg0, %c0_i32, %c0_i32_0 : i32, i32, i32
  }
  func.func @transform_1(%arg0: i32) -> (i32, i32, i32) {
    %c0_i32 = arith.constant 0 : i32
    %c0_i32_0 = arith.constant 0 : i32
    %c0_i32_1 = arith.constant 0 : i32
    return %arg0, %c0_i32, %c0_i32_0 : i32, i32, i32
  }
  func.func @transform_2(%arg0: i32) -> (i32, i32) {
    %c0_i32 = arith.constant 0 : i32
    %c0_i32_0 = arith.constant 0 : i32
    %c0_i32_1 = arith.constant 0 : i32
    return %c0_i32, %c0_i32_0 : i32, i32
  }
  func.func @transform_3(%arg0: i32) -> (i32, i32) {
    %c0_i32 = arith.constant 0 : i32
    %c0_i32_0 = arith.constant 0 : i32
    %c0_i32_1 = arith.constant 0 : i32
    return %c0_i32, %c0_i32_0 : i32, i32
  }
  func.func @transform_4(%arg0: i32) -> (i32, i32) {
    %c0_i32 = arith.constant 0 : i32
    %c0_i32_0 = arith.constant 0 : i32
    %c0_i32_1 = arith.constant 0 : i32
    return %c0_i32, %c0_i32_0 : i32, i32
  }
  func.func @transform_5(%arg0: i32) -> (i32, i32) {
    %c0_i32 = arith.constant 0 : i32
    %c0_i32_0 = arith.constant 0 : i32
    %c0_i32_1 = arith.constant 0 : i32
    return %c0_i32, %c0_i32_0 : i32, i32
  }
  func.func @transform_6(%arg0: i32) -> (i32, i32) {
    %c0_i32 = arith.constant 0 : i32
    %c0_i32_0 = arith.constant 0 : i32
    %c0_i32_1 = arith.constant 0 : i32
    return %c0_i32, %c0_i32_0 : i32, i32
  }
  func.func @transform_7(%arg0: i32) -> (i32, i32) {
    %c0_i32 = arith.constant 0 : i32
    %c0_i32_0 = arith.constant 0 : i32
    %c0_i32_1 = arith.constant 0 : i32
    return %c0_i32, %c0_i32_0 : i32, i32
  }
  func.func @transform_8(%arg0: i32) -> (i32, i32) {
    %c0_i32 = arith.constant 0 : i32
    %c0_i32_0 = arith.constant 0 : i32
    %c0_i32_1 = arith.constant 0 : i32
    return %c0_i32, %c0_i32_0 : i32, i32
  }
  func.func @transform_9(%arg0: i32) -> (i32, i32) {
    %c0_i32 = arith.constant 0 : i32
    %c0_i32_0 = arith.constant 0 : i32
    %c0_i32_1 = arith.constant 0 : i32
    return %c0_i32, %c0_i32_0 : i32, i32
  }
  func.func @transform_10(%arg0: i32) -> (i32, i32, i32) {
    %c0_i32 = arith.constant 0 : i32
    %c0_i32_0 = arith.constant 0 : i32
    %c0_i32_1 = arith.constant 0 : i32
    return %arg0, %c0_i32, %c0_i32_0 : i32, i32, i32
  }
  func.func @transform_11(%arg0: i32) -> (i32, i32, i32) {
    %c0_i32 = arith.constant 0 : i32
    %c0_i32_0 = arith.constant 0 : i32
    %c0_i32_1 = arith.constant 0 : i32
    return %arg0, %c0_i32, %c0_i32_0 : i32, i32, i32
  }
  func.func @transform_12(%arg0: i32) -> (i32, i32, i32) {
    %c0_i32 = arith.constant 0 : i32
    %c0_i32_0 = arith.constant 0 : i32
    %c0_i32_1 = arith.constant 0 : i32
    return %arg0, %c0_i32, %c0_i32_0 : i32, i32, i32
  }
  func.func @transform_13(%arg0: i32) -> (i32, i32, i32) {
    %c0_i32 = arith.constant 0 : i32
    %c0_i32_0 = arith.constant 0 : i32
    %c0_i32_1 = arith.constant 0 : i32
    return %arg0, %c0_i32, %c0_i32_0 : i32, i32, i32
  }
}

module attributes {stable_mosaic.version = 11 : i64} {
  func.func @kernel(%arg0: i32, %arg1: memref<2x8x128xbf16, #tpu.memory_space<vmem>>, %arg2: memref<2x8x128xbf16, #tpu.memory_space<vmem>>, %arg3: memref<2x128xf32, #tpu.memory_space<vmem>>, %arg4: memref<1x128xf32, #tpu.memory_space<vmem>>, %arg5: memref<3x128xf32, #tpu.memory_space<vmem>>, %arg6: memref<1x128xf32, #tpu.memory_space<vmem>>, %arg7: memref<128x128xbf16, #tpu.memory_space<vmem>>, %arg8: memref<1x128xf32, #tpu.memory_space<vmem>>, %arg9: memref<2x8x128xbf16, #tpu.memory_space<vmem>>, %arg10: memref<1x2x128xf32, #tpu.memory_space<vmem>>) attributes {dimension_semantics = [#tpu.dimension_semantics<parallel>], iteration_bounds = array<i64: 1>, scalar_prefetch = 0 : i64, scratch_operands = 0 : i64, tpu.core_type = #tpu.core_type<tc>, window_params = [{transform_indices = @transform_0, window_bounds = array<i64: 2, 8, 128>}, {transform_indices = @transform_1, window_bounds = array<i64: 2, 8, 128>}, {pipeline_mode = #tpu.pipeline_mode<synchronous>, transform_indices = @transform_2, window_bounds = array<i64: 2, 128>}, {pipeline_mode = #tpu.pipeline_mode<synchronous>, transform_indices = @transform_3, window_bounds = array<i64: 1, 128>}, {pipeline_mode = #tpu.pipeline_mode<synchronous>, transform_indices = @transform_4, window_bounds = array<i64: 3, 128>}, {pipeline_mode = #tpu.pipeline_mode<synchronous>, transform_indices = @transform_5, window_bounds = array<i64: 1, 128>}, {pipeline_mode = #tpu.pipeline_mode<synchronous>, transform_indices = @transform_6, window_bounds = array<i64: 128, 128>}, {pipeline_mode = #tpu.pipeline_mode<synchronous>, transform_indices = @transform_7, window_bounds = array<i64: 1, 128>}, {transform_indices = @transform_8, window_bounds = array<i64: 2, 8, 128>}, {transform_indices = @transform_9, window_bounds = array<i64: 1, 2, 128>}]} {
    %c0 = arith.constant 0 : index
    %c0_0 = arith.constant 0 : index
    %c0_1 = arith.constant 0 : index
    %0 = vector.load %arg1[%c0, %c0_0, %c0_1] : memref<2x8x128xbf16, #tpu.memory_space<vmem>>, vector<2x8x128xbf16>
    %1 = vector.shape_cast %0 : vector<2x8x128xbf16> to vector<16x128xbf16>
    %2 = arith.extf %1 : vector<16x128xbf16> to vector<16x128xf32>
    %c0_2 = arith.constant 0 : index
    %c0_3 = arith.constant 0 : index
    %3 = vector.load %arg3[%c0_2, %c0_3] : memref<2x128xf32, #tpu.memory_space<vmem>>, vector<1x128xf32>
    %4 = vector.broadcast %3 : vector<1x128xf32> to vector<16x128xf32>
    %5 = arith.mulf %2, %4 : vector<16x128xf32>
    %c0_4 = arith.constant 0 : index
    %c0_5 = arith.constant 0 : index
    %c0_6 = arith.constant 0 : index
    %6 = vector.load %arg2[%c0_4, %c0_5, %c0_6] : memref<2x8x128xbf16, #tpu.memory_space<vmem>>, vector<2x8x128xbf16>
    %7 = vector.shape_cast %6 : vector<2x8x128xbf16> to vector<16x128xbf16>
    %8 = arith.extf %7 : vector<16x128xbf16> to vector<16x128xf32>
    %c1 = arith.constant 1 : index
    %c0_7 = arith.constant 0 : index
    %9 = vector.load %arg3[%c1, %c0_7] : memref<2x128xf32, #tpu.memory_space<vmem>>, vector<1x128xf32>
    %10 = vector.broadcast %9 : vector<1x128xf32> to vector<16x128xf32>
    %11 = arith.mulf %8, %10 : vector<16x128xf32>
    %12 = arith.addf %5, %11 : vector<16x128xf32>
    %c0_8 = arith.constant 0 : index
    %c0_9 = arith.constant 0 : index
    %13 = vector.load %arg4[%c0_8, %c0_9] : memref<1x128xf32, #tpu.memory_space<vmem>>, vector<1x128xf32>
    %14 = vector.broadcast %13 : vector<1x128xf32> to vector<16x128xf32>
    %15 = arith.addf %12, %14 : vector<16x128xf32>
    %cst = arith.constant 0.000000e+00 : f32
    %16 = vector.broadcast %cst : f32 to vector<16x128xf32>
    %17 = arith.maximumf %15, %16 : vector<16x128xf32>
    %18 = vector.shape_cast %17 : vector<16x128xf32> to vector<2x8x128xf32>
    %cst_10 = arith.constant 0.000000e+00 : f32
    %19 = vector.broadcast %cst_10 : f32 to vector<2x1x128xf32>
    %20 = vector.extract_strided_slice %18 {offsets = [0, 0, 0], sizes = [2, 7, 128], strides = [1, 1, 1]} : vector<2x8x128xf32> to vector<2x7x128xf32>
    %21 = tpu.concatenate %19, %20 in 1 : vector<2x1x128xf32>, vector<2x7x128xf32> -> vector<2x8x128xf32>
    %22 = vector.shape_cast %21 : vector<2x8x128xf32> to vector<16x128xf32>
    %23 = vector.extract_strided_slice %18 {offsets = [0, 1, 0], sizes = [2, 7, 128], strides = [1, 1, 1]} : vector<2x8x128xf32> to vector<2x7x128xf32>
    %24 = tpu.concatenate %23, %19 in 1 : vector<2x7x128xf32>, vector<2x1x128xf32> -> vector<2x8x128xf32>
    %25 = vector.shape_cast %24 : vector<2x8x128xf32> to vector<16x128xf32>
    %c0_11 = arith.constant 0 : index
    %c0_12 = arith.constant 0 : index
    %26 = vector.load %arg5[%c0_11, %c0_12] : memref<3x128xf32, #tpu.memory_space<vmem>>, vector<1x128xf32>
    %27 = vector.broadcast %26 : vector<1x128xf32> to vector<16x128xf32>
    %28 = arith.mulf %22, %27 : vector<16x128xf32>
    %c1_13 = arith.constant 1 : index
    %c0_14 = arith.constant 0 : index
    %29 = vector.load %arg5[%c1_13, %c0_14] : memref<3x128xf32, #tpu.memory_space<vmem>>, vector<1x128xf32>
    %30 = vector.broadcast %29 : vector<1x128xf32> to vector<16x128xf32>
    %31 = arith.mulf %17, %30 : vector<16x128xf32>
    %32 = arith.addf %28, %31 : vector<16x128xf32>
    %c2 = arith.constant 2 : index
    %c0_15 = arith.constant 0 : index
    %33 = vector.load %arg5[%c2, %c0_15] : memref<3x128xf32, #tpu.memory_space<vmem>>, vector<1x128xf32>
    %34 = vector.broadcast %33 : vector<1x128xf32> to vector<16x128xf32>
    %35 = arith.mulf %25, %34 : vector<16x128xf32>
    %36 = arith.addf %32, %35 : vector<16x128xf32>
    %c0_16 = arith.constant 0 : index
    %c0_17 = arith.constant 0 : index
    %37 = vector.load %arg6[%c0_16, %c0_17] : memref<1x128xf32, #tpu.memory_space<vmem>>, vector<1x128xf32>
    %38 = vector.broadcast %37 : vector<1x128xf32> to vector<16x128xf32>
    %39 = arith.addf %36, %38 : vector<16x128xf32>
    %40 = arith.truncf %39 : vector<16x128xf32> to vector<16x128xbf16>
    %c0_18 = arith.constant 0 : index
    %c0_19 = arith.constant 0 : index
    %41 = vector.load %arg7[%c0_18, %c0_19] : memref<128x128xbf16, #tpu.memory_space<vmem>>, vector<128x128xbf16>
    %cst_20 = arith.constant dense<0.000000e+00> : vector<16x128xf32>
    %42 = tpu.matmul %40, %41, %cst_20 {dimension_numbers = #tpu.dot_dimension_numbers<[1], [0], [0], [1], [0, 0, 1, 1], [], []>} : vector<16x128xbf16>, vector<128x128xbf16>, vector<16x128xf32> -> vector<16x128xf32>
    %c0_21 = arith.constant 0 : index
    %c0_22 = arith.constant 0 : index
    %43 = vector.load %arg8[%c0_21, %c0_22] : memref<1x128xf32, #tpu.memory_space<vmem>>, vector<1x128xf32>
    %44 = vector.broadcast %43 : vector<1x128xf32> to vector<16x128xf32>
    %45 = arith.addf %42, %44 : vector<16x128xf32>
    %cst_23 = arith.constant dense<0.000000e+00> : vector<128xf32>
    %46 = vector.multi_reduction <add>, %45, %cst_23 [0] : vector<16x128xf32> to vector<128xf32>
    %47 = vector.shape_cast %46 : vector<128xf32> to vector<1x128xf32>
    %cst_24 = arith.constant 6.250000e-02 : f32
    %48 = vector.broadcast %cst_24 : f32 to vector<1x128xf32>
    %49 = arith.mulf %47, %48 : vector<1x128xf32>
    %50 = vector.broadcast %49 : vector<1x128xf32> to vector<16x128xf32>
    %51 = arith.subf %45, %50 : vector<16x128xf32>
    %c0_25 = arith.constant 0 : index
    %c0_26 = arith.constant 0 : index
    %c0_27 = arith.constant 0 : index
    %52 = vector.load %arg10[%c0_25, %c0_26, %c0_27] : memref<1x2x128xf32, #tpu.memory_space<vmem>>, vector<1x1x128xf32>
    %53 = vector.shape_cast %52 : vector<1x1x128xf32> to vector<1x128xf32>
    %54 = vector.shape_cast %47 : vector<1x128xf32> to vector<1x1x128xf32>
    tpu.vector_store %arg10[%c0_25, %c0_26, %c0_27], %54 {strides = array<i32>} : memref<1x2x128xf32, #tpu.memory_space<vmem>>, vector<1x1x128xf32>,
    %55 = arith.mulf %51, %51 : vector<16x128xf32>
    %cst_28 = arith.constant dense<0.000000e+00> : vector<128xf32>
    %56 = vector.multi_reduction <add>, %55, %cst_28 [0] : vector<16x128xf32> to vector<128xf32>
    %57 = vector.shape_cast %56 : vector<128xf32> to vector<1x128xf32>
    %c0_29 = arith.constant 0 : index
    %c1_30 = arith.constant 1 : index
    %c0_31 = arith.constant 0 : index
    %58 = vector.load %arg10[%c0_29, %c1_30, %c0_31] : memref<1x2x128xf32, #tpu.memory_space<vmem>>, vector<1x1x128xf32>
    %59 = vector.shape_cast %58 : vector<1x1x128xf32> to vector<1x128xf32>
    %60 = vector.shape_cast %57 : vector<1x128xf32> to vector<1x1x128xf32>
    tpu.vector_store %arg10[%c0_29, %c1_30, %c0_31], %60 {strides = array<i32>} : memref<1x2x128xf32, #tpu.memory_space<vmem>>, vector<1x1x128xf32>,
    %61 = arith.truncf %45 : vector<16x128xf32> to vector<16x128xbf16>
    %62 = vector.shape_cast %61 : vector<16x128xbf16> to vector<2x8x128xbf16>
    %c0_32 = arith.constant 0 : index
    %c0_33 = arith.constant 0 : index
    %c0_34 = arith.constant 0 : index
    %63 = vector.load %arg9[%c0_32, %c0_33, %c0_34] : memref<2x8x128xbf16, #tpu.memory_space<vmem>>, vector<2x8x128xbf16>
    tpu.vector_store %arg9[%c0_32, %c0_33, %c0_34], %62 {strides = array<i32>} : memref<2x8x128xbf16, #tpu.memory_space<vmem>>, vector<2x8x128xbf16>,
    return
  }
  func.func @transform_0(%arg0: i32) -> (i32, i32, i32) {
    %c0_i32 = arith.constant 0 : i32
    %c0_i32_0 = arith.constant 0 : i32
    %c0_i32_1 = arith.constant 0 : i32
    return %arg0, %c0_i32, %c0_i32_0 : i32, i32, i32
  }
  func.func @transform_1(%arg0: i32) -> (i32, i32, i32) {
    %c0_i32 = arith.constant 0 : i32
    %c0_i32_0 = arith.constant 0 : i32
    %c0_i32_1 = arith.constant 0 : i32
    return %arg0, %c0_i32, %c0_i32_0 : i32, i32, i32
  }
  func.func @transform_2(%arg0: i32) -> (i32, i32) {
    %c0_i32 = arith.constant 0 : i32
    %c0_i32_0 = arith.constant 0 : i32
    %c0_i32_1 = arith.constant 0 : i32
    return %c0_i32, %c0_i32_0 : i32, i32
  }
  func.func @transform_3(%arg0: i32) -> (i32, i32) {
    %c0_i32 = arith.constant 0 : i32
    %c0_i32_0 = arith.constant 0 : i32
    %c0_i32_1 = arith.constant 0 : i32
    return %c0_i32, %c0_i32_0 : i32, i32
  }
  func.func @transform_4(%arg0: i32) -> (i32, i32) {
    %c0_i32 = arith.constant 0 : i32
    %c0_i32_0 = arith.constant 0 : i32
    %c0_i32_1 = arith.constant 0 : i32
    return %c0_i32, %c0_i32_0 : i32, i32
  }
  func.func @transform_5(%arg0: i32) -> (i32, i32) {
    %c0_i32 = arith.constant 0 : i32
    %c0_i32_0 = arith.constant 0 : i32
    %c0_i32_1 = arith.constant 0 : i32
    return %c0_i32, %c0_i32_0 : i32, i32
  }
  func.func @transform_6(%arg0: i32) -> (i32, i32) {
    %c0_i32 = arith.constant 0 : i32
    %c0_i32_0 = arith.constant 0 : i32
    %c0_i32_1 = arith.constant 0 : i32
    return %c0_i32, %c0_i32_0 : i32, i32
  }
  func.func @transform_7(%arg0: i32) -> (i32, i32) {
    %c0_i32 = arith.constant 0 : i32
    %c0_i32_0 = arith.constant 0 : i32
    %c0_i32_1 = arith.constant 0 : i32
    return %c0_i32, %c0_i32_0 : i32, i32
  }
  func.func @transform_8(%arg0: i32) -> (i32, i32, i32) {
    %c0_i32 = arith.constant 0 : i32
    %c0_i32_0 = arith.constant 0 : i32
    %c0_i32_1 = arith.constant 0 : i32
    return %arg0, %c0_i32, %c0_i32_0 : i32, i32, i32
  }
  func.func @transform_9(%arg0: i32) -> (i32, i32, i32) {
    %c0_i32 = arith.constant 0 : i32
    %c0_i32_0 = arith.constant 0 : i32
    %c0_i32_1 = arith.constant 0 : i32
    return %arg0, %c0_i32, %c0_i32_0 : i32, i32, i32
  }
}

module attributes {stable_mosaic.version = 11 : i64} {
  func.func @kernel(%arg0: i32, %arg1: memref<2x8x128xbf16, #tpu.memory_space<vmem>>, %arg2: memref<2x8x128xbf16, #tpu.memory_space<vmem>>, %arg3: memref<2x128xf32, #tpu.memory_space<vmem>>, %arg4: memref<1x128xf32, #tpu.memory_space<vmem>>, %arg5: memref<2x8x128xf32, #tpu.memory_space<vmem>>) attributes {dimension_semantics = [#tpu.dimension_semantics<parallel>], iteration_bounds = array<i64: 1>, scalar_prefetch = 0 : i64, scratch_operands = 0 : i64, tpu.core_type = #tpu.core_type<tc>, window_params = [{transform_indices = @transform_0, window_bounds = array<i64: 2, 8, 128>}, {transform_indices = @transform_1, window_bounds = array<i64: 2, 8, 128>}, {pipeline_mode = #tpu.pipeline_mode<synchronous>, transform_indices = @transform_2, window_bounds = array<i64: 2, 128>}, {pipeline_mode = #tpu.pipeline_mode<synchronous>, transform_indices = @transform_3, window_bounds = array<i64: 1, 128>}, {transform_indices = @transform_4, window_bounds = array<i64: 2, 8, 128>}]} {
    %c0 = arith.constant 0 : index
    %c0_0 = arith.constant 0 : index
    %c0_1 = arith.constant 0 : index
    %0 = vector.load %arg1[%c0, %c0_0, %c0_1] : memref<2x8x128xbf16, #tpu.memory_space<vmem>>, vector<2x8x128xbf16>
    %1 = vector.shape_cast %0 : vector<2x8x128xbf16> to vector<16x128xbf16>
    %2 = arith.extf %1 : vector<16x128xbf16> to vector<16x128xf32>
    %c0_2 = arith.constant 0 : index
    %c0_3 = arith.constant 0 : index
    %3 = vector.load %arg3[%c0_2, %c0_3] : memref<2x128xf32, #tpu.memory_space<vmem>>, vector<1x128xf32>
    %4 = vector.broadcast %3 : vector<1x128xf32> to vector<16x128xf32>
    %5 = arith.mulf %2, %4 : vector<16x128xf32>
    %c0_4 = arith.constant 0 : index
    %c0_5 = arith.constant 0 : index
    %c0_6 = arith.constant 0 : index
    %6 = vector.load %arg2[%c0_4, %c0_5, %c0_6] : memref<2x8x128xbf16, #tpu.memory_space<vmem>>, vector<2x8x128xbf16>
    %7 = vector.shape_cast %6 : vector<2x8x128xbf16> to vector<16x128xbf16>
    %8 = arith.extf %7 : vector<16x128xbf16> to vector<16x128xf32>
    %c1 = arith.constant 1 : index
    %c0_7 = arith.constant 0 : index
    %9 = vector.load %arg3[%c1, %c0_7] : memref<2x128xf32, #tpu.memory_space<vmem>>, vector<1x128xf32>
    %10 = vector.broadcast %9 : vector<1x128xf32> to vector<16x128xf32>
    %11 = arith.mulf %8, %10 : vector<16x128xf32>
    %12 = arith.addf %5, %11 : vector<16x128xf32>
    %c0_8 = arith.constant 0 : index
    %c0_9 = arith.constant 0 : index
    %13 = vector.load %arg4[%c0_8, %c0_9] : memref<1x128xf32, #tpu.memory_space<vmem>>, vector<1x128xf32>
    %14 = vector.broadcast %13 : vector<1x128xf32> to vector<16x128xf32>
    %15 = arith.addf %12, %14 : vector<16x128xf32>
    %16 = vector.shape_cast %15 : vector<16x128xf32> to vector<2x8x128xf32>
    %c0_10 = arith.constant 0 : index
    %c0_11 = arith.constant 0 : index
    %c0_12 = arith.constant 0 : index
    %17 = vector.load %arg5[%c0_10, %c0_11, %c0_12] : memref<2x8x128xf32, #tpu.memory_space<vmem>>, vector<2x8x128xf32>
    tpu.vector_store %arg5[%c0_10, %c0_11, %c0_12], %16 {strides = array<i32>} : memref<2x8x128xf32, #tpu.memory_space<vmem>>, vector<2x8x128xf32>,
    return
  }
  func.func @transform_0(%arg0: i32) -> (i32, i32, i32) {
    %c0_i32 = arith.constant 0 : i32
    %c0_i32_0 = arith.constant 0 : i32
    %c0_i32_1 = arith.constant 0 : i32
    return %arg0, %c0_i32, %c0_i32_0 : i32, i32, i32
  }
  func.func @transform_1(%arg0: i32) -> (i32, i32, i32) {
    %c0_i32 = arith.constant 0 : i32
    %c0_i32_0 = arith.constant 0 : i32
    %c0_i32_1 = arith.constant 0 : i32
    return %arg0, %c0_i32, %c0_i32_0 : i32, i32, i32
  }
  func.func @transform_2(%arg0: i32) -> (i32, i32) {
    %c0_i32 = arith.constant 0 : i32
    %c0_i32_0 = arith.constant 0 : i32
    %c0_i32_1 = arith.constant 0 : i32
    return %c0_i32, %c0_i32_0 : i32, i32
  }
  func.func @transform_3(%arg0: i32) -> (i32, i32) {
    %c0_i32 = arith.constant 0 : i32
    %c0_i32_0 = arith.constant 0 : i32
    %c0_i32_1 = arith.constant 0 : i32
    return %c0_i32, %c0_i32_0 : i32, i32
  }
  func.func @transform_4(%arg0: i32) -> (i32, i32, i32) {
    %c0_i32 = arith.constant 0 : i32
    %c0_i32_0 = arith.constant 0 : i32
    %c0_i32_1 = arith.constant 0 : i32
    return %arg0, %c0_i32, %c0_i32_0 : i32, i32, i32
  }
}

</mosaic_0001>

<bundles_post_ra>
// kernel: stage_block_forward.9
= control target key start
LH: loop header
LB: loop body
LE: loop exit
PB: predicated region body
PF: predicated region fallthrough
CT: control target
= control target key end

     0   :  { %s113_s0 = inlined_call_operand.vmem [shape: bf16[2,8,128], index: 0, kind: input, shape index: {}]   ;;  %s114_s1 = inlined_call_operand.vmem [shape: bf16[2,8,128], index: 1, kind: input, shape index: {}]   ;;  %s115_s2 = inlined_call_operand.vmem [shape: f32[2,128], index: 2, kind: input, shape index: {}]   ;;  %s116_s3 = inlined_call_operand.vmem [shape: f32[1,128], index: 3, kind: input, shape index: {}]   ;;  %s117_s4 = inlined_call_operand.vmem [shape: f32[2,8,128], index: 4, kind: output, shape index: {}]  }
   0x1   :  { %v60_v0 = vld [vmem:[%s113_s0] sm:$0xff]  }
   0x2   :  { %v56_v1 = vld [vmem:[%s115_s2] ss:$0 sm:$0xff]  ;;  %v61_v3 = vunpack.c.l.bf16 %v60_v0  ;;  %v57_v5 = vld [vmem:[%s115_s2 + $0x1] ss:$0 sm:$0xff]  ;;  %v62_v6 = vunpack.c.h.bf16 %v60_v0 }
   0x3   :  { %v64_v2 = vld [vmem:[%s114_s1] sm:$0xff]  }
   0x4   :  { %v65_v4 = vunpack.c.l.bf16 %v64_v2  ;;  %v66_v7 = vunpack.c.h.bf16 %v64_v2  ;;  %v26_v8 = vmul.f32 %v61_v3, %v56_v1  ;;  %v27_v10 = vmul.f32 %v62_v6, %v56_v1  ;;  %v58_v12 = vld [vmem:[%s116_s3] ss:$0 sm:$0xff] }
   0x6   :  { %v37_v9 = vmul.f32 %v65_v4, %v57_v5  ;;  %v38_v11 = vmul.f32 %v66_v7, %v57_v5 }
   0x8   :  { %v39_v13 = vadd.f32 %v37_v9, %v26_v8  ;;  %v40_v14 = vadd.f32 %v38_v11, %v27_v10 }
   0xa   :  { %v48_v15 = vadd.f32 %v58_v12, %v39_v13  ;;  %v49_v16 = vadd.f32 %v58_v12, %v40_v14 }
   0xc   :  { %50 = vst [vmem:[%s117_s4] sm:$0xff] %v48_v15  ;;  %51 = vst [vmem:[%s117_s4 + $0x8] sm:$0xff] %v49_v16 }

// kernel: stage_block_forward.6
= control target key start
LH: loop header
LB: loop body
LE: loop exit
PB: predicated region body
PF: predicated region fallthrough
CT: control target
= control target key end

     0   :  { %v341_v0 = vmov 0.0   ;;  %vm342_vm0 = vmmov 0   ;;  %vm73_vm1 = vcmask 1040384   ;;  %vm80_vm2 = vcmask 1046528   ;;  %s465_s6 = inlined_call_operand.vmem [shape: bf16[128,128], index: 6, kind: input, shape index: {}]   ;;  %s466_s0 = inlined_call_operand.vmem [shape: bf16[2,8,128], index: 0, kind: input, shape index: {}]   ;;  %s467_s1 = inlined_call_operand.vmem [shape: bf16[2,8,128], index: 1, kind: input, shape index: {}]   ;;  %s468_s2 = inlined_call_operand.vmem [shape: f32[2,128], index: 2, kind: input, shape index: {}]   ;;  %s469_s3 = inlined_call_operand.vmem [shape: f32[1,128], index: 3, kind: input, shape index: {}]   ;;  %s470_s4 = inlined_call_operand.vmem [shape: f32[3,128], index: 4, kind: input, shape index: {}]   ;;  %s471_s5 = inlined_call_operand.vmem [shape: f32[1,128], index: 5, kind: input, shape index: {}]   ;;  %s472_s7 = inlined_call_operand.vmem [shape: f32[1,128], index: 7, kind: input, shape index: {}]   ;;  %s473_s8 = inlined_call_operand.vmem [shape: bf16[2,8,128], index: 8, kind: output, shape index: {0}]   ;;  %s474_s9 = inlined_call_operand.vmem [shape: f32[1,2,128], index: 9, kind: output, shape index: {1}]  }
   0x1   :  { %311 = vmatprep.subr.bf16.mxu0 %v341_v0  ;;  %v333_v1 = vld [vmem:[%s465_s6] sm:$0xff]   ;;  %327 = vmatprep.mubr.msk.bf16.mxu0 %vm342_vm0, %v341_v0  ;;  %v334_v2 = vld [vmem:[%s465_s6 + $0x8] sm:$0xff]   ;;  %v335_v3 = vld [vmem:[%s465_s6 + $0x10] sm:$0xff]  }
   0x2   :  { %312 = vmatpush3.bf16.msra.mxu0 %v333_v1  ;;  %v290_v4 = vld [vmem:[%s466_s0] sm:$0xff]   ;;  %v336_v12 = vld [vmem:[%s465_s6 + $0x18] sm:$0xff]   ;;  %v338_v26 = vld [vmem:[%s465_s6 + $0x28] sm:$0xff]  }
   0x3   :  { %313 = vmatprep.subr.bf16.mxu0 %v341_v0  ;;  %v269_v5 = vld [vmem:[%s468_s2] ss:$0 sm:$0xff]  ;;  %v291_v7 = vunpack.c.l.bf16 %v290_v4  ;;  %v292_v8 = vunpack.c.h.bf16 %v290_v4  ;;  %v270_v11 = vld [vmem:[%s468_s2 + $0x1] ss:$0 sm:$0xff]  ;;  %v274_v32 = vld [vmem:[%s470_s4 + $0x2] ss:$0 sm:$0xff] }
   0x4   :  { %v294_v6 = vld [vmem:[%s467_s1] sm:$0xff]   ;;  %v339_v39 = vld [vmem:[%s465_s6 + $0x30] sm:$0xff]   ;;  %v340_v47 = vld [vmem:[%s465_s6 + $0x38] sm:$0xff]  }
   0x5   :  { %v295_v9 = vunpack.c.l.bf16 %v294_v6  ;;  %v296_v10 = vunpack.c.h.bf16 %v294_v6  ;;  %v41_v13 = vmul.f32 %v291_v7, %v269_v5  ;;  %v42_v14 = vmul.f32 %v292_v8, %v269_v5  ;;  %v271_v17 = vld [vmem:[%s469_s3] ss:$0 sm:$0xff]  ;;  %v273_v25 = vld [vmem:[%s470_s4 + $0x1] ss:$0 sm:$0xff] }
   0x6   :  { %314 = vmatpush3.bf16.msra.mxu0 %v334_v2  ;;  %v337_v20 = vld [vmem:[%s465_s6 + $0x20] sm:$0xff]  }
   0x7   :  { %315 = vmatprep.subr.bf16.mxu0 %v341_v0  ;;  %v52_v15 = vmul.f32 %v295_v9, %v270_v11  ;;  %v53_v16 = vmul.f32 %v296_v10, %v270_v11  ;;  %v272_v27 = vld [vmem:[%s470_s4] ss:$0 sm:$0xff] }
   0x8   :  { %v275_v46 = vld [vmem:[%s471_s5] ss:$0 sm:$0xff] }
   0x9   :  { %v54_v18 = vadd.f32 %v52_v15, %v41_v13  ;;  %v55_v19 = vadd.f32 %v53_v16, %v42_v14  ;;  %v276_v53 = vld [vmem:[%s472_s7] ss:$0 sm:$0xff] }
   0xa   :  { %316 = vmatpush3.bf16.msra.mxu0 %v335_v3 }
   0xb   :  { %317 = vmatprep.subr.bf16.mxu0 %v341_v0  ;;  %v63_v21 = vadd.f32 %v271_v17, %v54_v18  ;;  %v64_v22 = vadd.f32 %v271_v17, %v55_v19 }
   0xd   :  { %v65_v23 = vmax.f32 %v63_v21, 0.0  ;;  %v66_v24 = vmax.f32 %v64_v22, 0.0 }
   0xe   :  { %318 = vmatpush3.bf16.msra.mxu0 %v336_v12 }
   0xf   :  { %319 = vmatprep.subr.bf16.mxu0 %v341_v0  ;;  %v69_v28 = vrot.slane %v65_v23, 7  ;;  %v70_v29 = vrot.slane %v66_v24, 7  ;;  %v76_v30 = vrot.slane %v65_v23, 1  ;;  %v77_v31 = vrot.slane %v66_v24, 1 }
  0x10   :  { %v95_v33 = vmul.f32 %v273_v25, %v65_v23  ;;  %v96_v34 = vmul.f32 %v273_v25, %v66_v24 }
  0x11   :  { %v74_v35 = vsel %vm73_vm1, 0.0, %v69_v28  ;;  %v75_v36 = vsel %vm73_vm1, 0.0, %v70_v29  ;;  %v81_v37 = vsel %vm80_vm2, %v76_v30, 0.0  ;;  %v82_v38 = vsel %vm80_vm2, %v77_v31, 0.0 }
  0x12   :  { %320 = vmatpush3.bf16.msra.mxu0 %v337_v20  ;;  %v88_v40 = vmul.f32 %v272_v27, %v74_v35  ;;  %v89_v41 = vmul.f32 %v272_v27, %v75_v36  ;;  %v104_v42 = vmul.f32 %v274_v32, %v81_v37  ;;  %v105_v43 = vmul.f32 %v274_v32, %v82_v38 }
  0x13   :  { %321 = vmatprep.subr.bf16.mxu0 %v341_v0 }
  0x14   :  { %v97_v44 = vadd.f32 %v95_v33, %v88_v40  ;;  %v98_v45 = vadd.f32 %v96_v34, %v89_v41 }
  0x16   :  { %322 = vmatpush3.bf16.msra.mxu0 %v338_v26  ;;  %v106_v48 = vadd.f32 %v104_v42, %v97_v44  ;;  %v107_v49 = vadd.f32 %v105_v43, %v98_v45 }
  0x17   :  { %323 = vmatprep.subr.bf16.mxu0 %v341_v0 }
  0x18   :  { %v115_v50 = vadd.f32 %v275_v46, %v106_v48  ;;  %v116_v51 = vadd.f32 %v275_v46, %v107_v49 }
  0x1a   :  { %324 = vmatpush3.bf16.msra.mxu0 %v339_v39  ;;  %v117_v52 = vpack.c.bf16 %v116_v51, %v115_v50 }
  0x1b   :  { %325 = vmatprep.subr.bf16.mxu0 %v341_v0 }
  0x1e   :  { %326 = vmatpush3.bf16.msra.mxu0 %v340_v47 }
  0x21   :  { %328 = vmatmul.mubr.bf16.vlgmr.msra.gmra.mrb[0].mxu0 %v117_v52 }
  0xf4   :  { %v223_v54 = vpop.f32.mrb[0].mxu0 }
  0xf5   :  { %v329_v55 = vpop.f32.mrb[1].mxu0  ;;  %v224_v57 = vadd.f32 %v276_v53, %v223_v54 }
  0xf6   :  { %v226_v56 = vpop.f32.mrb[2].mxu0 }
  0xf7   :  { %v227_v58 = vadd.f32 %v276_v53, %v226_v56  ;;  %v330_v59 = vpop.f32.mrb[3].mxu0 }
  0xf9   :  { %v230_v60 = vadd.f32 %v227_v58, %v224_v57  ;;  %v300_v61 = vpack.c.bf16 %v227_v58, %v224_v57 }
  0xfb   :  { %v231_v62 = vrot.slane %v230_v60, 4  ;;  %301 = vst [vmem:[%s473_s8] sm:$0xff] %v300_v61  }
  0xfd   :  { %v232_v63 = vadd.f32 %v231_v62, %v230_v60 }
  0xff   :  { %v233_v0 = vrot.slane %v232_v63, 2 }
 0x101   :  { %v234_v1 = vadd.f32 %v233_v0, %v232_v63 }
 0x103   :  { %v235_v2 = vrot.slane %v234_v1, 1 }
 0x105   :  { %v236_v3 = vadd.f32 %v235_v2, %v234_v1 }
 0x107   :  { %v237_v4 = vmul.f32 0.0625, %v236_v3  ;;  %240 = vst [vmem:[%s474_s9] sm:$0x1] %v236_v3 }
 0x109   :  { %v238_v5 = vsub.f32 %v224_v57, %v237_v4  ;;  %v239_v6 = vsub.f32 %v227_v58, %v237_v4 }
 0x10b   :  { %v241_v7 = vmul.f32 %v238_v5, %v238_v5  ;;  %v242_v8 = vmul.f32 %v239_v6, %v239_v6 }
 0x10d   :  { %v243_v9 = vadd.f32 %v242_v8, %v241_v7 }
 0x10f   :  { %v244_v10 = vrot.slane %v243_v9, 4 }
 0x111   :  { %v245_v11 = vadd.f32 %v244_v10, %v243_v9 }
 0x113   :  { %v246_v12 = vrot.slane %v245_v11, 2 }
 0x115   :  { %v247_v13 = vadd.f32 %v246_v12, %v245_v11 }
 0x117   :  { %v248_v14 = vrot.slane %v247_v13, 1 }
 0x119   :  { %v249_v15 = vadd.f32 %v248_v14, %v247_v13 }
 0x11b   :  { %250 = vst [vmem:[%s474_s9 + $0x1] sm:$0x1] %v249_v15 }

// kernel: stage_block_forward.5
= control target key start
LH: loop header
LB: loop body
LE: loop exit
PB: predicated region body
PF: predicated region fallthrough
CT: control target
= control target key end

     0   :  { %v549_v0 = vmov 0.0   ;;  %vm550_vm0 = vmmov 0   ;;  %vm54_vm1 = vcmask 1040384   ;;  %s749_s4 = inlined_call_operand.vmem [shape: bf16[128,128], index: 4, kind: input, shape index: {}]   ;;  %s750_s8 = inlined_call_operand.vmem [shape: bf16[128,128], index: 8, kind: input, shape index: {}]   ;;  %s751_s0 = inlined_call_operand.vmem [shape: f32[2,8,128], index: 0, kind: input, shape index: {}]   ;;  %s752_s1 = inlined_call_operand.vmem [shape: f32[2,8,128], index: 1, kind: input, shape index: {}]   ;;  %s753_s2 = inlined_call_operand.vmem [shape: f32[3,128], index: 2, kind: input, shape index: {}]   ;;  %s754_s6 = inlined_call_operand.vmem [shape: f32[3,128], index: 6, kind: input, shape index: {}]   ;;  %s755_s3 = inlined_call_operand.vmem [shape: f32[1,128], index: 3, kind: input, shape index: {}]   ;;  %s756_s7 = inlined_call_operand.vmem [shape: f32[1,128], index: 7, kind: input, shape index: {}]   ;;  %s757_s5 = inlined_call_operand.vmem [shape: f32[1,128], index: 5, kind: input, shape index: {}]   ;;  %s758_s9 = inlined_call_operand.vmem [shape: f32[1,128], index: 9, kind: input, shape index: {}]   ;;  %s759_s10 = inlined_call_operand.vmem [shape: bf16[2,8,128], index: 10, kind: output, shape index: {0}]   ;;  %s760_s11 = inlined_call_operand.vmem [shape: bf16[2,8,128], index: 11, kind: output, shape index: {1}]   ;;  %s761_s12 = inlined_call_operand.vmem [shape: f32[1,2,128], index: 12, kind: output, shape index: {2}]   ;;  %s762_s13 = inlined_call_operand.vmem [shape: f32[1,2,128], index: 13, kind: output, shape index: {3}]  }
   0x1   :  { %491 = vmatprep.subr.bf16.mxu0 %v549_v0  ;;  %511 = vmatprep.subr.bf16.mxu1 %v549_v0  ;;  %v533_v1 = vld [vmem:[%s749_s4] sm:$0xff]   ;;  %v535_v3 = vld [vmem:[%s749_s4 + $0x8] sm:$0xff]   ;;  %v537_v5 = vld [vmem:[%s749_s4 + $0x10] sm:$0xff]  }
   0x2   :  { %v534_v2 = vld [vmem:[%s750_s8] sm:$0xff]   ;;  %507 = vmatprep.mubr.msk.bf16.mxu0 %vm550_vm0, %v549_v0  ;;  %527 = vmatprep.mubr.msk.bf16.mxu1 %vm550_vm0, %v549_v0  ;;  %v536_v4 = vld [vmem:[%s750_s8 + $0x8] sm:$0xff]   ;;  %v538_v6 = vld [vmem:[%s750_s8 + $0x10] sm:$0xff]  }
   0x3   :  { %492 = vmatpush3.bf16.msra.mxu0 %v533_v1  ;;  %512 = vmatpush3.bf16.msra.mxu1 %v534_v2  ;;  %v539_v7 = vld [vmem:[%s749_s4 + $0x18] sm:$0xff]   ;;  %v541_v9 = vld [vmem:[%s749_s4 + $0x20] sm:$0xff]   ;;  %v41_v12 = vld [vmem:[%s751_s0 + $0x8] sm:$0xff] }
   0x4   :  { %493 = vmatprep.subr.bf16.mxu0 %v549_v0  ;;  %513 = vmatprep.subr.bf16.mxu1 %v549_v0  ;;  %v540_v8 = vld [vmem:[%s750_s8 + $0x18] sm:$0xff]   ;;  %v542_v10 = vld [vmem:[%s750_s8 + $0x20] sm:$0xff]   ;;  %v43_v15 = vmax.f32 %v41_v12, 0.0  ;;  %v45_v16 = vld [vmem:[%s752_s1 + $0x8] sm:$0xff] }
   0x5   :  { %v40_v11 = vld [vmem:[%s751_s0] sm:$0xff]  ;;  %v543_v18 = vld [vmem:[%s749_s4 + $0x28] sm:$0xff]   ;;  %v47_v19 = vmax.f32 %v45_v16, 0.0  ;;  %v545_v36 = vld [vmem:[%s749_s4 + $0x30] sm:$0xff]  }
   0x6   :  { %v44_v13 = vld [vmem:[%s752_s1] sm:$0xff]  ;;  %v42_v14 = vmax.f32 %v40_v11, 0.0  ;;  %v544_v22 = vld [vmem:[%s750_s8 + $0x28] sm:$0xff]   ;;  %v546_v41 = vld [vmem:[%s750_s8 + $0x30] sm:$0xff]  }
   0x7   :  { %494 = vmatpush3.bf16.msra.mxu0 %v535_v3  ;;  %514 = vmatpush3.bf16.msra.mxu1 %v536_v4  ;;  %v46_v17 = vmax.f32 %v44_v13, 0.0  ;;  %v430_v20 = vld [vmem:[%s753_s2 + $0x1] ss:$0 sm:$0xff]  ;;  %v431_v21 = vld [vmem:[%s753_s2 + $0x2] ss:$0 sm:$0xff]  ;;  %v51_v26 = vrot.slane %v47_v19, 7 }
   0x8   :  { %495 = vmatprep.subr.bf16.mxu0 %v549_v0  ;;  %515 = vmatprep.subr.bf16.mxu1 %v549_v0  ;;  %v429_v24 = vld [vmem:[%s753_s2] ss:$0 sm:$0xff]  ;;  %v69_v27 = vmul.f32 %v430_v20, %v42_v14  ;;  %v70_v28 = vmul.f32 %v430_v20, %v43_v15  ;;  %v445_v30 = vld [vmem:[%s754_s6 + $0x1] ss:$0 sm:$0xff]  ;;  %v446_v31 = vld [vmem:[%s754_s6 + $0x2] ss:$0 sm:$0xff]  ;;  %v79_v33 = vmul.f32 %v431_v21, %v47_v19 }
   0x9   :  { %v50_v23 = vrot.slane %v46_v17, 7  ;;  %v444_v25 = vld [vmem:[%s754_s6] ss:$0 sm:$0xff]  ;;  %v78_v29 = vmul.f32 %v431_v21, %v46_v17  ;;  %v247_v34 = vmul.f32 %v445_v30, %v42_v14  ;;  %v248_v35 = vmul.f32 %v445_v30, %v43_v15  ;;  %v547_v51 = vld [vmem:[%s749_s4 + $0x38] sm:$0xff]  }
   0xa   :  { %v56_v37 = vsel %vm54_vm1, 0.0, %v51_v26  ;;  %v256_v40 = vmul.f32 %v446_v31, %v46_v17  ;;  %v257_v44 = vmul.f32 %v446_v31, %v47_v19  ;;  %v432_v48 = vld [vmem:[%s755_s3] ss:$0 sm:$0xff]  ;;  %v548_v54 = vld [vmem:[%s750_s8 + $0x38] sm:$0xff]  }
   0xb   :  { %496 = vmatpush3.bf16.msra.mxu0 %v537_v5  ;;  %516 = vmatpush3.bf16.msra.mxu1 %v538_v6  ;;  %v55_v32 = vsel %vm54_vm1, 0.0, %v50_v23  ;;  %v63_v42 = vmul.f32 %v429_v24, %v56_v37  ;;  %v241_v43 = vmul.f32 %v444_v25, %v56_v37  ;;  %v447_v50 = vld [vmem:[%s756_s7] ss:$0 sm:$0xff] }
   0xc   :  { %497 = vmatprep.subr.bf16.mxu0 %v549_v0  ;;  %517 = vmatprep.subr.bf16.mxu1 %v549_v0  ;;  %v62_v38 = vmul.f32 %v429_v24, %v55_v32  ;;  %v240_v39 = vmul.f32 %v444_v25, %v55_v32  ;;  %v433_v63 = vld [vmem:[%s757_s5] ss:$0 sm:$0xff] }
   0xd   :  { %v72_v47 = vadd.f32 %v70_v28, %v63_v42  ;;  %v250_v49 = vadd.f32 %v248_v35, %v241_v43  ;;  %v448_v2 = vld [vmem:[%s758_s9] ss:$0 sm:$0xff] }
   0xe   :  { %v71_v45 = vadd.f32 %v69_v27, %v62_v38  ;;  %v249_v46 = vadd.f32 %v247_v34, %v240_v39 }
   0xf   :  { %498 = vmatpush3.bf16.msra.mxu0 %v539_v7  ;;  %518 = vmatpush3.bf16.msra.mxu1 %v540_v8  ;;  %v81_v55 = vadd.f32 %v79_v33, %v72_v47  ;;  %v259_v56 = vadd.f32 %v257_v44, %v250_v49 }
  0x10   :  { %499 = vmatprep.subr.bf16.mxu0 %v549_v0  ;;  %519 = vmatprep.subr.bf16.mxu1 %v549_v0  ;;  %v80_v52 = vadd.f32 %v78_v29, %v71_v45  ;;  %v258_v53 = vadd.f32 %v256_v40, %v249_v46 }
  0x11   :  { %v90_v59 = vadd.f32 %v432_v48, %v81_v55  ;;  %v268_v60 = vadd.f32 %v447_v50, %v259_v56 }
  0x12   :  { %v89_v57 = vadd.f32 %v432_v48, %v80_v52  ;;  %v267_v58 = vadd.f32 %v447_v50, %v258_v53 }
  0x13   :  { %500 = vmatpush3.bf16.msra.mxu0 %v541_v9  ;;  %520 = vmatpush3.bf16.msra.mxu1 %v542_v10 }
  0x14   :  { %501 = vmatprep.subr.bf16.mxu0 %v549_v0  ;;  %521 = vmatprep.subr.bf16.mxu1 %v549_v0  ;;  %v91_v61 = vpack.c.bf16 %v90_v59, %v89_v57  ;;  %v269_v62 = vpack.c.bf16 %v268_v60, %v267_v58 }
  0x17   :  { %502 = vmatpush3.bf16.msra.mxu0 %v543_v18  ;;  %522 = vmatpush3.bf16.msra.mxu1 %v544_v22 }
  0x18   :  { %503 = vmatprep.subr.bf16.mxu0 %v549_v0  ;;  %523 = vmatprep.subr.bf16.mxu1 %v549_v0 }
  0x1b   :  { %504 = vmatpush3.bf16.msra.mxu0 %v545_v36  ;;  %524 = vmatpush3.bf16.msra.mxu1 %v546_v41 }
  0x1c   :  { %505 = vmatprep.subr.bf16.mxu0 %v549_v0  ;;  %525 = vmatprep.subr.bf16.mxu1 %v549_v0 }
  0x1f   :  { %506 = vmatpush3.bf16.msra.mxu0 %v547_v51  ;;  %526 = vmatpush3.bf16.msra.mxu1 %v548_v54 }
  0x22   :  { %508 = vmatmul.mubr.bf16.vlgmr.msra.gmra.mrb[0].mxu0 %v91_v61  ;;  %528 = vmatmul.mubr.bf16.vlgmr.msra.gmra.mrb[0].mxu1 %v269_v62 }
  0xf5   :  { %v197_v1 = vpop.f32.mrb[0].mxu0  ;;  %v375_v0 = vpop.f32.mrb[0].mxu1 }
  0xf6   :  { %v509_v3 = vpop.f32.mrb[1].mxu0  ;;  %v529_v4 = vpop.f32.mrb[1].mxu1  ;;  %v198_v6 = vadd.f32 %v433_v63, %v197_v1  ;;  %v376_v10 = vadd.f32 %v448_v2, %v375_v0 }
  0xf7   :  { %v200_v5 = vpop.f32.mrb[2].mxu0  ;;  %v378_v8 = vpop.f32.mrb[2].mxu1 }
  0xf8   :  { %v201_v7 = vadd.f32 %v433_v63, %v200_v5  ;;  %v510_v9 = vpop.f32.mrb[3].mxu0  ;;  %v379_v11 = vadd.f32 %v448_v2, %v378_v8  ;;  %v530_v12 = vpop.f32.mrb[3].mxu1 }
  0xfa   :  { %v204_v13 = vadd.f32 %v201_v7, %v198_v6  ;;  %v466_v14 = vpack.c.bf16 %v201_v7, %v198_v6  ;;  %v382_v15 = vadd.f32 %v379_v11, %v376_v10  ;;  %v471_v16 = vpack.c.bf16 %v379_v11, %v376_v10 }
  0xfc   :  { %v205_v17 = vrot.slane %v204_v13, 4  ;;  %467 = vst [vmem:[%s759_s10] sm:$0xff] %v466_v14   ;;  %v383_v18 = vrot.slane %v382_v15, 4  ;;  %472 = vst [vmem:[%s760_s11] sm:$0xff] %v471_v16  }
  0xfe   :  { %v206_v19 = vadd.f32 %v205_v17, %v204_v13  ;;  %v384_v20 = vadd.f32 %v383_v18, %v382_v15 }
 0x100   :  { %v207_v21 = vrot.slane %v206_v19, 2  ;;  %v385_v22 = vrot.slane %v384_v20, 2 }
 0x102   :  { %v208_v23 = vadd.f32 %v207_v21, %v206_v19  ;;  %v386_v24 = vadd.f32 %v385_v22, %v384_v20 }
 0x104   :  { %v209_v25 = vrot.slane %v208_v23, 1  ;;  %v387_v26 = vrot.slane %v386_v24, 1 }
 0x106   :  { %v210_v27 = vadd.f32 %v209_v25, %v208_v23  ;;  %v388_v28 = vadd.f32 %v387_v26, %v386_v24 }
 0x108   :  { %v211_v29 = vmul.f32 0.0625, %v210_v27  ;;  %214 = vst [vmem:[%s761_s12] sm:$0x1] %v210_v27  ;;  %v389_v30 = vmul.f32 0.0625, %v388_v28  ;;  %392 = vst [vmem:[%s762_s13] sm:$0x1] %v388_v28 }
 0x10a   :  { %v212_v31 = vsub.f32 %v198_v6, %v211_v29  ;;  %v213_v32 = vsub.f32 %v201_v7, %v211_v29  ;;  %v390_v33 = vsub.f32 %v376_v10, %v389_v30  ;;  %v391_v34 = vsub.f32 %v379_v11, %v389_v30 }
 0x10c   :  { %v215_v35 = vmul.f32 %v212_v31, %v212_v31  ;;  %v216_v36 = vmul.f32 %v213_v32, %v213_v32  ;;  %v393_v37 = vmul.f32 %v390_v33, %v390_v33  ;;  %v394_v38 = vmul.f32 %v391_v34, %v391_v34 }
 0x10e   :  { %v217_v39 = vadd.f32 %v216_v36, %v215_v35  ;;  %v395_v40 = vadd.f32 %v394_v38, %v393_v37 }
 0x110   :  { %v218_v41 = vrot.slane %v217_v39, 4  ;;  %v396_v42 = vrot.slane %v395_v40, 4 }
 0x112   :  { %v219_v43 = vadd.f32 %v218_v41, %v217_v39  ;;  %v397_v44 = vadd.f32 %v396_v42, %v395_v40 }
 0x114   :  { %v220_v45 = vrot.slane %v219_v43, 2  ;;  %v398_v46 = vrot.slane %v397_v44, 2 }
 0x116   :  { %v221_v47 = vadd.f32 %v220_v45, %v219_v43  ;;  %v399_v48 = vadd.f32 %v398_v46, %v397_v44 }
 0x118   :  { %v222_v49 = vrot.slane %v221_v47, 1  ;;  %v400_v50 = vrot.slane %v399_v48, 1 }
 0x11a   :  { %v223_v51 = vadd.f32 %v222_v49, %v221_v47  ;;  %v401_v52 = vadd.f32 %v400_v50, %v399_v48 }
 0x11c   :  { %224 = vst [vmem:[%s761_s12 + $0x1] sm:$0x1] %v223_v51  ;;  %402 = vst [vmem:[%s762_s13 + $0x1] sm:$0x1] %v401_v52 }

</bundles_post_ra>
